<compile_context>
chip_gen: v7x
topology: tpu7x:2x2x1
jax: 0.10.0
libtpu: 0.0.40
codegen_flags: <defaults>
</compile_context>

<pallas_src>
import functools

import jax
import jax.numpy as jnp
from jax.experimental import pallas as pl
from jax.experimental.pallas import tpu as pltpu

NCLS_PAD = 128  # lane-dense classifier / output width (sliced back in the wrapper)


# ----------------------------------------------------------------------------
# Pallas kernel: fused conv(3 dy-matmuls) + bias + ReLU + avgpool + linear head
# ----------------------------------------------------------------------------
def _fused_cnn_kernel(xs_ref, wblk_ref, bconv_ref, pool_ref, wsel_ref, bf_ref,
                      out_ref):
    # xs_ref   : (3, N*H, W*3*Cin)   dy-pre-shifted, dx/channel-interleaved input
    # wblk_ref : (3, W*3*Cin, W*Cout) block-diagonal per-dy conv weights (128 lanes)
    # bconv_ref: (1, W*Cout)          conv bias tiled over w
    # pool_ref : (N, N*H)             block-diagonal ones (per-image row sum)
    # wsel_ref : (W*Cout, NCLS_PAD)   classifier weight, w-tiled, 1/(H*W) folded in
    # bf_ref   : (1, NCLS_PAD)        classifier bias (zero padded)
    # out_ref  : (N, NCLS_PAD)        padded logits for the whole batch
    nh = xs_ref.shape[1]
    w_cout = wblk_ref.shape[2]                       # = 128 lanes

    # conv as 3 lane-dense matmuls over the whole batch (M = N*H rows)
    acc = jnp.zeros((nh, w_cout), dtype=jnp.float32)
    for dy in range(3):                              # static -> unrolled, 3 MXU pushes
        acc = acc + jnp.dot(xs_ref[dy], wblk_ref[dy],
                            preferred_element_type=jnp.float32)

    act = jnp.maximum(acc + bconv_ref[...], 0.0)     # (N*H, W*Cout)

    # per-image sum over h via a skinny block-diagonal matmul (MXU, not XLU)
    pooled = jnp.dot(pool_ref[...], act,
                     preferred_element_type=jnp.float32)            # (N, W*Cout)

    # classifier; the sum over w and the 1/(H*W) scale live inside wsel
    logits = jnp.dot(pooled, wsel_ref[...],
                     preferred_element_type=jnp.float32) + bf_ref[...]

    out_ref[...] = logits.astype(out_ref.dtype)      # single lane-dense store


def _run_fused_cnn(xs, wblk, bconv, pool, wsel, bf_pad):
    n_batch = pool.shape[0]
    nh = xs.shape[1]

    out_bytes = n_batch * NCLS_PAD * 4
    in_bytes = sum(int(a.size) * a.dtype.itemsize
                   for a in (xs, wblk, bconv, pool, wsel, bf_pad))
    flops = (2 * 3 * nh * xs.shape[2] * wblk.shape[2]          # conv taps
             + 2 * n_batch * nh * wblk.shape[2]                # pooling
             + 2 * n_batch * wsel.shape[0] * wsel.shape[1])    # classifier

    return pl.pallas_call(
        _fused_cnn_kernel,
        out_shape=jax.ShapeDtypeStruct((n_batch, NCLS_PAD), jnp.float32),
        grid_spec=pltpu.PrefetchScalarGridSpec(
            num_scalar_prefetch=0,
            grid=(1,),                                # single step: no per-step overhead
            in_specs=[
                pl.BlockSpec(xs.shape, lambda i: (0, 0, 0)),
                pl.BlockSpec(wblk.shape, lambda i: (0, 0, 0)),
                pl.BlockSpec(bconv.shape, lambda i: (0, 0)),
                pl.BlockSpec(pool.shape, lambda i: (0, 0)),
                pl.BlockSpec(wsel.shape, lambda i: (0, 0)),
                pl.BlockSpec(bf_pad.shape, lambda i: (0, 0)),
            ],
            out_specs=pl.BlockSpec((n_batch, NCLS_PAD), lambda i: (0, 0)),
        ),
        compiler_params=pltpu.CompilerParams(
            dimension_semantics=("arbitrary",)),      # never shard trivial work
        cost_estimate=pl.CostEstimate(flops=flops, transcendentals=0,
                                      bytes_accessed=in_bytes + out_bytes),
    )(xs, wblk, bconv, pool, wsel, bf_pad)


# ----------------------------------------------------------------------------
# one-time weight packing (wrapper side, cheap)
# ----------------------------------------------------------------------------
def _pack_params(params, H, W, ncls_pad):
    conv_w = params["conv_w"].astype(jnp.float32)     # (Cout, Cin, 3, 3) PyTorch layout
    cout, cin = conv_w.shape[0], conv_w.shape[1]
    hwio = jnp.transpose(conv_w, (2, 3, 1, 0))        # (3, 3, Cin, Cout)

    eye_w = jnp.eye(W, dtype=jnp.float32)
    # per-dy block-diagonal weights with dx folded into K:
    #   wblk[dy, w*(3*Cin) + dx*Cin + c, w*Cout + o] = hwio[dy, dx, c, o]
    wblk = jnp.stack(
        [jnp.kron(eye_w, hwio[dy].reshape(3 * cin, cout)) for dy in range(3)],
        axis=0)                                        # (3, W*3*Cin, W*Cout)

    bconv = jnp.tile(params["conv_b"].astype(jnp.float32), W)[None, :]  # (1, W*Cout)

    ncls = params["fc_w"].shape[0]
    wf_pad = jnp.zeros((cout, ncls_pad), jnp.float32).at[:, :ncls].set(
        params["fc_w"].astype(jnp.float32).T)          # (Cout, NCLS_PAD)
    # fold the w-sum and the 1/(H*W) mean scale into the classifier weight
    wsel = jnp.tile(wf_pad, (W, 1)) / float(H * W)     # (W*Cout, NCLS_PAD)
    bf_pad = jnp.zeros((1, ncls_pad), jnp.float32).at[0, :ncls].set(
        params["fc_b"].astype(jnp.float32))
    return wblk, bconv, wsel, bf_pad


def _pack_pool(n_batch, H):
    # block-diagonal per-image row-sum matrix: pool[n, n*H + y] = 1
    return jnp.kron(jnp.eye(n_batch, dtype=jnp.float32),
                    jnp.ones((1, H), dtype=jnp.float32))            # (N, N*H)


def _pack_input(x_nchw):
    # x_nchw: (N, Cin, H, W) float32 -> (3, N*H, W*3*Cin) dy-slabs
    x = jnp.transpose(x_nchw, (0, 2, 3, 1))                 # NHWC
    n, h, w, c = x.shape
    xp = jnp.pad(x, ((0, 0), (1, 1), (1, 1), (0, 0)))       # padding=1 -> (N,H+2,W+2,C)
    slabs = []
    for dy in range(3):
        rows = xp[:, dy:dy + h, :, :]                       # (N, H, W+2, C)
        taps = jnp.stack([rows[:, :, dx:dx + w, :] for dx in range(3)],
                         axis=3)                            # (N, H, W, 3, C)
        slabs.append(taps.reshape(n * h, w * 3 * c))        # (N*H, W*3*Cin)
    return jnp.stack(slabs, axis=0)                         # (3, N*H, W*3*Cin)


def _make_jitted_forward(num_classes):
    def fwd(x, wblk, bconv, pool, wsel, bf_pad):
        xs = _pack_input(x.astype(jnp.float32))
        out = _run_fused_cnn(xs, wblk, bconv, pool, wsel, bf_pad)
        return out[:, :num_classes]
    return jax.jit(fwd)


# ----------------------------------------------------------------------------
# JAX-side ModelWrapper equivalent
# ----------------------------------------------------------------------------
class PallasModelWrapper:
    """JAX/Pallas port of fluid_ai ModelWrapper wrapping a small CNN classifier."""

    def __init__(self, params, pretrained, classes, transform=None, input_hw=(16, 16)):
        self.params = params                  # "the wrapped model"
        self.pretrained = pretrained
        self.classes = classes
        self.transform = (lambda x: x) if transform is None else transform
        self.num_classes = int(params["fc_w"].shape[0])
        self.input_hw = input_hw
        # Pack kernel-side weights once (block-diag conv taps, folded classifier).
        self.wblk, self.bconv, self.wsel, self.bf_pad = _pack_params(
            params, input_hw[0], input_hw[1], NCLS_PAD)
        self._jit_forward = _make_jitted_forward(self.num_classes)
        self._pool_cache = {}
        # TODO(synk): `.to(self.device())` placement and nn.Module parameter
        # bookkeeping have no Pallas equivalent; JAX's default TPU backend owns
        # device placement.

    def _pool(self, n_batch):
        if n_batch not in self._pool_cache:
            self._pool_cache[n_batch] = _pack_pool(n_batch, self.input_hw[0])
        return self._pool_cache[n_batch]

    def forward(self, x):
        x = self.transform(x)                 # arbitrary user transform stays eager
        pool = self._pool(int(x.shape[0]))
        return self._jit_forward(x, self.wblk, self.bconv, pool,
                                 self.wsel, self.bf_pad)

    def __call__(self, x):
        return self.forward(x)

    def get_pred_idx(self, out):
        # Concrete implementation of the abstract method (classification argmax).
        return jnp.argmax(out, axis=-1)

    def get_preds(self, out):
        idx = self.get_pred_idx(out).astype(jnp.int32)
        return [self.classes[int(i)] for i in idx]


# ----------------------------------------------------------------------------
# Pure-JAX reference for correctness checking
# ----------------------------------------------------------------------------
def _reference_forward(x_nchw, params):
    out = jax.lax.conv_general_dilated(
        x_nchw.astype(jnp.float32), params["conv_w"],
        window_strides=(1, 1), padding="SAME",
        dimension_numbers=("NCHW", "OIHW", "NCHW"))
    out = out + params["conv_b"][None, :, None, None]
    out = jnp.maximum(out, 0.0)
    pooled = jnp.mean(out, axis=(2, 3))                    # (N, Cout)
    return pooled @ params["fc_w"].T + params["fc_b"]


if __name__ == "__main__":
    key = jax.random.PRNGKey(0)
    k_x, k_cw, k_cb, k_fw, k_fb = jax.random.split(key, 5)

    N, Cin, H, W = 2, 4, 16, 16
    Cout, NCLS = 8, 5

    x = jax.random.normal(k_x, (N, Cin, H, W), dtype=jnp.float32)   # NCHW input

    params = {
        "conv_w": 0.1 * jax.random.normal(k_cw, (Cout, Cin, 3, 3), dtype=jnp.float32),
        "conv_b": 0.1 * jax.random.normal(k_cb, (Cout,), dtype=jnp.float32),
        "fc_w":   0.1 * jax.random.normal(k_fw, (NCLS, Cout), dtype=jnp.float32),
        "fc_b":   0.1 * jax.random.normal(k_fb, (NCLS,), dtype=jnp.float32),
    }

    classes = [f"class_{i}" for i in range(NCLS)]
    wrapper = PallasModelWrapper(params, pretrained=False, classes=classes,
                                 input_hw=(H, W))

    logits = wrapper(x)
    logits = jax.block_until_ready(logits)

    ref = _reference_forward(x, params)
    assert logits.shape == (N, NCLS)
    # tolerance allows for MXU default f32 matmul rounding; a packing/indexing bug
    # would show errors of order the logit magnitude (~1e-1), far above this.
    assert jnp.allclose(logits, ref, atol=1e-3, rtol=1e-3), "mismatch vs reference"

    _ = wrapper.get_preds(logits)   # exercise the classes lookup path

    print("KERNEL_OK")
</pallas_src>

<mosaic_0001>
module attributes {stable_mosaic.version = 11 : i64} {
  func.func @_fused_cnn_kernel(%arg0: i32, %arg1: memref<3x32x192xf32, #tpu.memory_space<vmem>>, %arg2: memref<3x192x128xf32, #tpu.memory_space<vmem>>, %arg3: memref<1x128xf32, #tpu.memory_space<vmem>>, %arg4: memref<2x32xf32, #tpu.memory_space<vmem>>, %arg5: memref<128x128xf32, #tpu.memory_space<vmem>>, %arg6: memref<1x128xf32, #tpu.memory_space<vmem>>, %arg7: memref<2x128xf32, #tpu.memory_space<vmem>>) attributes {dimension_semantics = [#tpu.dimension_semantics<arbitrary>], iteration_bounds = array<i64: 1>, scalar_prefetch = 0 : i64, scratch_operands = 0 : i64, tpu.core_type = #tpu.core_type<tc>, window_params = [{pipeline_mode = #tpu.pipeline_mode<synchronous>, transform_indices = @transform_0, window_bounds = array<i64: 3, 32, 192>}, {pipeline_mode = #tpu.pipeline_mode<synchronous>, transform_indices = @transform_1, window_bounds = array<i64: 3, 192, 128>}, {pipeline_mode = #tpu.pipeline_mode<synchronous>, transform_indices = @transform_2, window_bounds = array<i64: 1, 128>}, {pipeline_mode = #tpu.pipeline_mode<synchronous>, transform_indices = @transform_3, window_bounds = array<i64: 2, 32>}, {pipeline_mode = #tpu.pipeline_mode<synchronous>, transform_indices = @transform_4, window_bounds = array<i64: 128, 128>}, {pipeline_mode = #tpu.pipeline_mode<synchronous>, transform_indices = @transform_5, window_bounds = array<i64: 1, 128>}, {pipeline_mode = #tpu.pipeline_mode<synchronous>, transform_indices = @transform_6, window_bounds = array<i64: 2, 128>}]} {
    %cst = arith.constant 0.000000e+00 : f32
    %0 = vector.broadcast %cst : f32 to vector<32x128xf32>
    %c0 = arith.constant 0 : index
    %c0_0 = arith.constant 0 : index
    %c0_1 = arith.constant 0 : index
    %1 = vector.load %arg1[%c0, %c0_0, %c0_1] : memref<3x32x192xf32, #tpu.memory_space<vmem>>, vector<1x32x192xf32>
    %2 = vector.shape_cast %1 : vector<1x32x192xf32> to vector<32x192xf32>
    %c0_2 = arith.constant 0 : index
    %c0_3 = arith.constant 0 : index
    %c0_4 = arith.constant 0 : index
    %3 = vector.load %arg2[%c0_2, %c0_3, %c0_4] : memref<3x192x128xf32, #tpu.memory_space<vmem>>, vector<1x192x128xf32>
    %4 = vector.shape_cast %3 : vector<1x192x128xf32> to vector<192x128xf32>
    %cst_5 = arith.constant dense<0.000000e+00> : vector<32x128xf32>
    %5 = tpu.matmul %2, %4, %cst_5 {dimension_numbers = #tpu.dot_dimension_numbers<[1], [0], [0], [1], [0, 0, 1, 1], [], []>} : vector<32x192xf32>, vector<192x128xf32>, vector<32x128xf32> -> vector<32x128xf32>
    %6 = arith.addf %0, %5 : vector<32x128xf32>
    %c1 = arith.constant 1 : index
    %c0_6 = arith.constant 0 : index
    %c0_7 = arith.constant 0 : index
    %7 = vector.load %arg1[%c1, %c0_6, %c0_7] : memref<3x32x192xf32, #tpu.memory_space<vmem>>, vector<1x32x192xf32>
    %8 = vector.shape_cast %7 : vector<1x32x192xf32> to vector<32x192xf32>
    %c1_8 = arith.constant 1 : index
    %c0_9 = arith.constant 0 : index
    %c0_10 = arith.constant 0 : index
    %9 = vector.load %arg2[%c1_8, %c0_9, %c0_10] : memref<3x192x128xf32, #tpu.memory_space<vmem>>, vector<1x192x128xf32>
    %10 = vector.shape_cast %9 : vector<1x192x128xf32> to vector<192x128xf32>
    %cst_11 = arith.constant dense<0.000000e+00> : vector<32x128xf32>
    %11 = tpu.matmul %8, %10, %cst_11 {dimension_numbers = #tpu.dot_dimension_numbers<[1], [0], [0], [1], [0, 0, 1, 1], [], []>} : vector<32x192xf32>, vector<192x128xf32>, vector<32x128xf32> -> vector<32x128xf32>
    %12 = arith.addf %6, %11 : vector<32x128xf32>
    %c2 = arith.constant 2 : index
    %c0_12 = arith.constant 0 : index
    %c0_13 = arith.constant 0 : index
    %13 = vector.load %arg1[%c2, %c0_12, %c0_13] : memref<3x32x192xf32, #tpu.memory_space<vmem>>, vector<1x32x192xf32>
    %14 = vector.shape_cast %13 : vector<1x32x192xf32> to vector<32x192xf32>
    %c2_14 = arith.constant 2 : index
    %c0_15 = arith.constant 0 : index
    %c0_16 = arith.constant 0 : index
    %15 = vector.load %arg2[%c2_14, %c0_15, %c0_16] : memref<3x192x128xf32, #tpu.memory_space<vmem>>, vector<1x192x128xf32>
    %16 = vector.shape_cast %15 : vector<1x192x128xf32> to vector<192x128xf32>
    %cst_17 = arith.constant dense<0.000000e+00> : vector<32x128xf32>
    %17 = tpu.matmul %14, %16, %cst_17 {dimension_numbers = #tpu.dot_dimension_numbers<[1], [0], [0], [1], [0, 0, 1, 1], [], []>} : vector<32x192xf32>, vector<192x128xf32>, vector<32x128xf32> -> vector<32x128xf32>
    %18 = arith.addf %12, %17 : vector<32x128xf32>
    %c0_18 = arith.constant 0 : index
    %c0_19 = arith.constant 0 : index
    %19 = vector.load %arg3[%c0_18, %c0_19] : memref<1x128xf32, #tpu.memory_space<vmem>>, vector<1x128xf32>
    %20 = vector.broadcast %19 : vector<1x128xf32> to vector<32x128xf32>
    %21 = arith.addf %18, %20 : vector<32x128xf32>
    %cst_20 = arith.constant 0.000000e+00 : f32
    %22 = vector.broadcast %cst_20 : f32 to vector<32x128xf32>
    %23 = arith.maximumf %21, %22 : vector<32x128xf32>
    %c0_21 = arith.constant 0 : index
    %c0_22 = arith.constant 0 : index
    %24 = vector.load %arg4[%c0_21, %c0_22] : memref<2x32xf32, #tpu.memory_space<vmem>>, vector<2x32xf32>
    %cst_23 = arith.constant dense<0.000000e+00> : vector<2x128xf32>
    %25 = tpu.matmul %24, %23, %cst_23 {dimension_numbers = #tpu.dot_dimension_numbers<[1], [0], [0], [1], [0, 0, 1, 1], [], []>} : vector<2x32xf32>, vector<32x128xf32>, vector<2x128xf32> -> vector<2x128xf32>
    %c0_24 = arith.constant 0 : index
    %c0_25 = arith.constant 0 : index
    %26 = vector.load %arg5[%c0_24, %c0_25] : memref<128x128xf32, #tpu.memory_space<vmem>>, vector<128x128xf32>
    %cst_26 = arith.constant dense<0.000000e+00> : vector<2x128xf32>
    %27 = tpu.matmul %25, %26, %cst_26 {dimension_numbers = #tpu.dot_dimension_numbers<[1], [0], [0], [1], [0, 0, 1, 1], [], []>} : vector<2x128xf32>, vector<128x128xf32>, vector<2x128xf32> -> vector<2x128xf32>
    %c0_27 = arith.constant 0 : index
    %c0_28 = arith.constant 0 : index
    %28 = vector.load %arg6[%c0_27, %c0_28] : memref<1x128xf32, #tpu.memory_space<vmem>>, vector<1x128xf32>
    %29 = vector.broadcast %28 : vector<1x128xf32> to vector<2x128xf32>
    %30 = arith.addf %27, %29 : vector<2x128xf32>
    %c0_29 = arith.constant 0 : index
    %c0_30 = arith.constant 0 : index
    %31 = vector.load %arg7[%c0_29, %c0_30] : memref<2x128xf32, #tpu.memory_space<vmem>>, vector<2x128xf32>
    tpu.vector_store %arg7[%c0_29, %c0_30], %30 {strides = array<i32>} : memref<2x128xf32, #tpu.memory_space<vmem>>, vector<2x128xf32>,
    return
  }
  func.func @transform_0(%arg0: i32) -> (i32, i32, i32) {
    %c0_i32 = arith.constant 0 : i32
    %c0_i32_0 = arith.constant 0 : i32
    %c0_i32_1 = arith.constant 0 : i32
    %c0_i32_2 = arith.constant 0 : i32
    return %c0_i32, %c0_i32_0, %c0_i32_1 : i32, i32, i32
  }
  func.func @transform_1(%arg0: i32) -> (i32, i32, i32) {
    %c0_i32 = arith.constant 0 : i32
    %c0_i32_0 = arith.constant 0 : i32
    %c0_i32_1 = arith.constant 0 : i32
    %c0_i32_2 = arith.constant 0 : i32
    return %c0_i32, %c0_i32_0, %c0_i32_1 : i32, i32, i32
  }
  func.func @transform_2(%arg0: i32) -> (i32, i32) {
    %c0_i32 = arith.constant 0 : i32
    %c0_i32_0 = arith.constant 0 : i32
    %c0_i32_1 = arith.constant 0 : i32
    return %c0_i32, %c0_i32_0 : i32, i32
  }
  func.func @transform_3(%arg0: i32) -> (i32, i32) {
    %c0_i32 = arith.constant 0 : i32
    %c0_i32_0 = arith.constant 0 : i32
    %c0_i32_1 = arith.constant 0 : i32
    return %c0_i32, %c0_i32_0 : i32, i32
  }
  func.func @transform_4(%arg0: i32) -> (i32, i32) {
    %c0_i32 = arith.constant 0 : i32
    %c0_i32_0 = arith.constant 0 : i32
    %c0_i32_1 = arith.constant 0 : i32
    return %c0_i32, %c0_i32_0 : i32, i32
  }
  func.func @transform_5(%arg0: i32) -> (i32, i32) {
    %c0_i32 = arith.constant 0 : i32
    %c0_i32_0 = arith.constant 0 : i32
    %c0_i32_1 = arith.constant 0 : i32
    return %c0_i32, %c0_i32_0 : i32, i32
  }
  func.func @transform_6(%arg0: i32) -> (i32, i32) {
    %c0_i32 = arith.constant 0 : i32
    %c0_i32_0 = arith.constant 0 : i32
    %c0_i32_1 = arith.constant 0 : i32
    return %c0_i32, %c0_i32_0 : i32, i32
  }
}

</mosaic_0001>

<bundles_post_ra>
// kernel: fwd.1
= control target key start
LH: loop header
LB: loop body
LE: loop exit
PB: predicated region body
PF: predicated region fallthrough
CT: control target
= control target key end

     0   :  { %v931_v3 = vmov 0.0|0.0   ;;  %vm90_vm0 = vcmask 523264   ;;  %s1387_s0 = inlined_call_operand.vmem [shape: f32[3,32,192], index: 0, kind: input, shape index: {}]   ;;  %s1388_s1 = inlined_call_operand.vmem [shape: f32[3,192,128], index: 1, kind: input, shape index: {}]   ;;  %s1389_s2 = inlined_call_operand.vmem [shape: f32[1,128], index: 2, kind: input, shape index: {}]   ;;  %s1390_s3 = inlined_call_operand.vmem [shape: f32[2,32], index: 3, kind: input, shape index: {}]   ;;  %s1391_s4 = inlined_call_operand.vmem [shape: f32[128,128], index: 4, kind: input, shape index: {}]   ;;  %s1392_s5 = inlined_call_operand.vmem [shape: f32[1,128], index: 5, kind: input, shape index: {}]   ;;  %s1393_s6 = inlined_call_operand.hbm [shape: f32[2,128], index: 6, kind: output, shape index: {}]  }
   0x1   :  { %v626_v0 = vld [vmem:[%s1388_s1 + $0xc0] sm:$0xff]  ;;  %v627_v1 = vld [vmem:[%s1388_s1 + $0xc8] sm:$0xff]  ;;  %765 = vmatprep.subr.bf16.mxu0 %v931_v3  ;;  %801 = vmatprep.subr.bf16.mxu1 %v931_v3  ;;  %v628_v6 = vld [vmem:[%s1388_s1 + $0xd0] sm:$0xff] }
   0x2   :  { %v32_v2 = vld [vmem:[%s1388_s1] sm:$0xff]  ;;  %v766_v4 = vpack.c.bf16 %v627_v1, %v626_v0  ;;  %v33_v5 = vld [vmem:[%s1388_s1 + $0x8] sm:$0xff]  ;;  %v629_v7 = vld [vmem:[%s1388_s1 + $0xd8] sm:$0xff] }
   0x3   :  { %v802_v8 = vpack.c.bf16 %v33_v5, %v32_v2  ;;  %v34_v9 = vld [vmem:[%s1388_s1 + $0x10] sm:$0xff]  ;;  %v35_v10 = vld [vmem:[%s1388_s1 + $0x18] sm:$0xff]  ;;  %v769_v11 = vpack.c.bf16 %v629_v7, %v628_v6  ;;  %v630_v13 = vld [vmem:[%s1388_s1 + $0xe0] sm:$0xff] }
   0x4   :  { %767 = vmatpush1.bf16.msra.mxu0 %v766_v4  ;;  %v805_v12 = vpack.c.bf16 %v35_v10, %v34_v9  ;;  %v631_v14 = vld [vmem:[%s1388_s1 + $0xe8] sm:$0xff]  ;;  %v36_v15 = vld [vmem:[%s1388_s1 + $0x20] sm:$0xff]  ;;  %v632_v19 = vld [vmem:[%s1388_s1 + $0xf0] sm:$0xff] }
   0x5   :  { %803 = vmatpush1.bf16.msra.mxu1 %v802_v8  ;;  %768 = vmatprep.subr.bf16.mxu0 %v931_v3  ;;  %v37_v16 = vld [vmem:[%s1388_s1 + $0x28] sm:$0xff]  ;;  %v772_v17 = vpack.c.bf16 %v631_v14, %v630_v13  ;;  %v633_v20 = vld [vmem:[%s1388_s1 + $0xf8] sm:$0xff]  ;;  %v38_v21 = vld [vmem:[%s1388_s1 + $0x30] sm:$0xff] }
   0x6   :  { %804 = vmatprep.subr.bf16.mxu1 %v931_v3  ;;  %v808_v18 = vpack.c.bf16 %v37_v16, %v36_v15  ;;  %v39_v22 = vld [vmem:[%s1388_s1 + $0x38] sm:$0xff]  ;;  %v775_v23 = vpack.c.bf16 %v633_v20, %v632_v19  ;;  %v634_v25 = vld [vmem:[%s1388_s1 + $0x100] sm:$0xff]  ;;  %v635_v26 = vld [vmem:[%s1388_s1 + $0x108] sm:$0xff] }
   0x7   :  { %v811_v24 = vpack.c.bf16 %v39_v22, %v38_v21  ;;  %v40_v27 = vld [vmem:[%s1388_s1 + $0x40] sm:$0xff]  ;;  %v41_v28 = vld [vmem:[%s1388_s1 + $0x48] sm:$0xff]  ;;  %v778_v29 = vpack.c.bf16 %v635_v26, %v634_v25  ;;  %v636_v30 = vld [vmem:[%s1388_s1 + $0x110] sm:$0xff] }
   0x8   :  { %770 = vmatpush1.bf16.msra.mxu0 %v769_v11  ;;  %v814_v31 = vpack.c.bf16 %v41_v28, %v40_v27  ;;  %v637_v32 = vld [vmem:[%s1388_s1 + $0x118] sm:$0xff]  ;;  %v619_v33 = vld [vmem:[%s1387_s0 + $0x48] sm:$0xff]  ;;  %v42_v35 = vld [vmem:[%s1388_s1 + $0x50] sm:$0xff] }
   0x9   :  { %806 = vmatpush1.bf16.msra.mxu1 %v805_v12  ;;  %771 = vmatprep.subr.bf16.mxu0 %v931_v3  ;;  %v25_v34 = vld [vmem:[%s1387_s0 + $0x8] sm:$0xff]  ;;  %v43_v36 = vld [vmem:[%s1388_s1 + $0x58] sm:$0xff]  ;;  %v781_v37 = vpack.c.bf16 %v637_v32, %v636_v30  ;;  %v638_v39 = vld [vmem:[%s1388_s1 + $0x120] sm:$0xff] }
   0xa   :  { %807 = vmatprep.subr.bf16.mxu1 %v931_v3  ;;  %650 = vmatprep.mubr.msk.f32.mxu0 %vm90_vm0, %v619_v33  ;;  %v817_v38 = vpack.c.bf16 %v43_v36, %v42_v35  ;;  %v639_v40 = vld [vmem:[%s1388_s1 + $0x128] sm:$0xff]  ;;  %v44_v41 = vld [vmem:[%s1388_s1 + $0x60] sm:$0xff]  ;;  %v640_v45 = vld [vmem:[%s1388_s1 + $0x130] sm:$0xff] }
   0xb   :  { %654 = vmatprep.mubr.msk.f32.mxu1 %vm90_vm0, %v25_v34  ;;  %v45_v42 = vld [vmem:[%s1388_s1 + $0x68] sm:$0xff]  ;;  %v784_v43 = vpack.c.bf16 %v639_v40, %v638_v39  ;;  %v641_v46 = vld [vmem:[%s1388_s1 + $0x138] sm:$0xff]  ;;  %v46_v47 = vld [vmem:[%s1388_s1 + $0x70] sm:$0xff] }
   0xc   :  { %773 = vmatpush1.bf16.msra.mxu0 %v772_v17  ;;  %v820_v44 = vpack.c.bf16 %v45_v42, %v44_v41  ;;  %v47_v48 = vld [vmem:[%s1388_s1 + $0x78] sm:$0xff]  ;;  %v787_v49 = vpack.c.bf16 %v641_v46, %v640_v45  ;;  %v642_v51 = vld [vmem:[%s1388_s1 + $0x140] sm:$0xff]  ;;  %v643_v52 = vld [vmem:[%s1388_s1 + $0x148] sm:$0xff] }
   0xd   :  { %809 = vmatpush1.bf16.msra.mxu1 %v808_v18  ;;  %774 = vmatprep.subr.bf16.mxu0 %v931_v3  ;;  %v823_v50 = vpack.c.bf16 %v47_v48, %v46_v47  ;;  %v48_v53 = vld [vmem:[%s1388_s1 + $0x80] sm:$0xff]  ;;  %v49_v54 = vld [vmem:[%s1388_s1 + $0x88] sm:$0xff]  ;;  %v790_v55 = vpack.c.bf16 %v643_v52, %v642_v51  ;;  %v644_v57 = vld [vmem:[%s1388_s1 + $0x150] sm:$0xff] }
   0xe   :  { %810 = vmatprep.subr.bf16.mxu1 %v931_v3  ;;  %v826_v56 = vpack.c.bf16 %v49_v54, %v48_v53  ;;  %v645_v58 = vld [vmem:[%s1388_s1 + $0x158] sm:$0xff] }
  0x10   :  { %776 = vmatpush1.bf16.msra.mxu0 %v775_v23 }
  0x11   :  { %812 = vmatpush1.bf16.msra.mxu1 %v811_v24  ;;  %777 = vmatprep.subr.bf16.mxu0 %v931_v3 }
  0x12   :  { %813 = vmatprep.subr.bf16.mxu1 %v931_v3 }
  0x14   :  { %779 = vmatpush1.bf16.msra.mxu0 %v778_v29 }
  0x15   :  { %815 = vmatpush1.bf16.msra.mxu1 %v814_v31  ;;  %780 = vmatprep.subr.bf16.mxu0 %v931_v3 }
  0x16   :  { %816 = vmatprep.subr.bf16.mxu1 %v931_v3 }
  0x18   :  { %782 = vmatpush1.bf16.msra.mxu0 %v781_v37 }
  0x19   :  { %818 = vmatpush1.bf16.msra.mxu1 %v817_v38  ;;  %783 = vmatprep.subr.bf16.mxu0 %v931_v3 }
  0x1a   :  { %819 = vmatprep.subr.bf16.mxu1 %v931_v3 }
  0x1c   :  { %785 = vmatpush1.bf16.msra.mxu0 %v784_v43 }
  0x1d   :  { %821 = vmatpush1.bf16.msra.mxu1 %v820_v44  ;;  %786 = vmatprep.subr.bf16.mxu0 %v931_v3 }
  0x1e   :  { %822 = vmatprep.subr.bf16.mxu1 %v931_v3 }
  0x20   :  { %788 = vmatpush1.bf16.msra.mxu0 %v787_v49 }
  0x21   :  { %824 = vmatpush1.bf16.msra.mxu1 %v823_v50  ;;  %789 = vmatprep.subr.bf16.mxu0 %v931_v3 }
  0x22   :  { %11 = vsyncpa [#allocation3], 0  ;;  %825 = vmatprep.subr.bf16.mxu1 %v931_v3  ;;  %v50_v59 = vld [vmem:[%s1388_s1 + $0x90] sm:$0xff]  ;;  %v51_v60 = vld [vmem:[%s1388_s1 + $0x98] sm:$0xff]  ;;  %v793_v61 = vpack.c.bf16 %v645_v58, %v644_v57  ;;  %vm932_vm1 = vmmov 0   ;;  %vm436_vm2 = vcmask 261120  }
  0x23   :  { %v829_v62 = vpack.c.bf16 %v51_v60, %v50_v59  ;;  %v646_v63 = vld [vmem:[%s1388_s1 + $0x160] sm:$0xff]  ;;  %v647_v0 = vld [vmem:[%s1388_s1 + $0x168] sm:$0xff]  ;;  %v648_v6 = vld [vmem:[%s1388_s1 + $0x170] sm:$0xff]  ;;  %s934_s28 = smov [#allocation2]  }
  0x24   :  { %791 = vmatpush1.bf16.msra.mxu0 %v790_v55  ;;  %v52_v1 = vld [vmem:[%s1388_s1 + $0xa0] sm:$0xff]  ;;  %v53_v2 = vld [vmem:[%s1388_s1 + $0xa8] sm:$0xff]  ;;  %v796_v4 = vpack.c.bf16 %v647_v0, %v646_v63  ;;  %v649_v7 = vld [vmem:[%s1388_s1 + $0x178] sm:$0xff]  ;;  %s610_s29 = sshll.u32 %s934_s28, 4  ;;  %s611_s29 = int_to_ptr.vmem [resolvable:$true] %s610_s29 }
  0x25   :  { %827 = vmatpush1.bf16.msra.mxu1 %v826_v56  ;;  %792 = vmatprep.subr.bf16.mxu0 %v931_v3  ;;  %v832_v5 = vpack.c.bf16 %v53_v2, %v52_v1  ;;  %v54_v8 = vld [vmem:[%s1388_s1 + $0xb0] sm:$0xff]  ;;  %v55_v9 = vld [vmem:[%s1388_s1 + $0xb8] sm:$0xff]  ;;  %v799_v10 = vpack.c.bf16 %v649_v7, %v648_v6  ;;  %v666_v12 = vld [vmem:[%s1388_s1 + $0x180] sm:$0xff]  ;;  %v933_v7 = vmov 0.0   ;;  %p912_p1 = scmp.lt.s32.totalorder %s611_s29, %s611_s29 }
  0x26   :  { %828 = vmatprep.subr.bf16.mxu1 %v931_v3  ;;  %v835_v11 = vpack.c.bf16 %v55_v9, %v54_v8  ;;  %v667_v13 = vld [vmem:[%s1388_s1 + $0x188] sm:$0xff]  ;;  %v618_v14 = vld [vmem:[%s1387_s0 + $0x40] sm:$0xff]  ;;  %v668_v17 = vld [vmem:[%s1388_s1 + $0x190] sm:$0xff] }
  0x27   :  { %v838_v15 = vpack.c.bf16 %v667_v13, %v666_v12  ;;  %v24_v16 = vld [vmem:[%s1387_s0] sm:$0xff]  ;;  %v669_v18 = vld [vmem:[%s1388_s1 + $0x198] sm:$0xff]  ;;  %v620_v22 = vld [vmem:[%s1387_s0 + $0x50] sm:$0xff] }
  0x28   :  { %794 = vmatpush1.bf16.msra.mxu0 %v793_v61  ;;  %v621_v19 = vld [vmem:[%s1387_s0 + $0x58] sm:$0xff]  ;;  %v841_v21 = vpack.c.bf16 %v669_v18, %v668_v17  ;;  %v670_v23 = vld [vmem:[%s1388_s1 + $0x1a0] sm:$0xff]  ;;  %v671_v24 = vld [vmem:[%s1388_s1 + $0x1a8] sm:$0xff] }
  0x29   :  { %830 = vmatpush1.bf16.msra.mxu1 %v829_v62  ;;  %795 = vmatprep.subr.bf16.mxu0 %v931_v3  ;;  %v27_v20 = vld [vmem:[%s1387_s0 + $0x18] sm:$0xff]  ;;  %v26_v25 = vld [vmem:[%s1387_s0 + $0x10] sm:$0xff]  ;;  %v623_v26 = vld [vmem:[%s1387_s0 + $0x68] sm:$0xff]  ;;  %v844_v28 = vpack.c.bf16 %v671_v24, %v670_v23 }
  0x2a   :  { %831 = vmatprep.subr.bf16.mxu1 %v931_v3  ;;  %v29_v27 = vld [vmem:[%s1387_s0 + $0x28] sm:$0xff]  ;;  %v622_v29 = vld [vmem:[%s1387_s0 + $0x60] sm:$0xff]  ;;  %v672_v30 = vld [vmem:[%s1388_s1 + $0x1b0] sm:$0xff] }
  0x2b   :  { %v673_v31 = vld [vmem:[%s1388_s1 + $0x1b8] sm:$0xff]  ;;  %v28_v32 = vld [vmem:[%s1387_s0 + $0x20] sm:$0xff]  ;;  %v624_v36 = vld [vmem:[%s1387_s0 + $0x70] sm:$0xff] }
  0x2c   :  { %797 = vmatpush1.bf16.msra.mxu0 %v796_v4  ;;  %v625_v33 = vld [vmem:[%s1387_s0 + $0x78] sm:$0xff]  ;;  %v847_v35 = vpack.c.bf16 %v673_v31, %v672_v30  ;;  %v674_v37 = vld [vmem:[%s1388_s1 + $0x1c0] sm:$0xff]  ;;  %v675_v38 = vld [vmem:[%s1388_s1 + $0x1c8] sm:$0xff] }
  0x2d   :  { %833 = vmatpush1.bf16.msra.mxu1 %v832_v5  ;;  %798 = vmatprep.subr.bf16.mxu0 %v931_v3  ;;  %v31_v34 = vld [vmem:[%s1387_s0 + $0x38] sm:$0xff]  ;;  %v30_v39 = vld [vmem:[%s1387_s0 + $0x30] sm:$0xff]  ;;  %v659_v40 = vld [vmem:[%s1387_s0 + $0x88] sm:$0xff]  ;;  %v850_v41 = vpack.c.bf16 %v675_v38, %v674_v37 }
  0x2e   :  { %834 = vmatprep.subr.bf16.mxu1 %v931_v3  ;;  %v676_v42 = vld [vmem:[%s1388_s1 + $0x1d0] sm:$0xff]  ;;  %v677_v43 = vld [vmem:[%s1388_s1 + $0x1d8] sm:$0xff]  ;;  %v678_v45 = vld [vmem:[%s1388_s1 + $0x1e0] sm:$0xff] }
  0x2f   :  { %v853_v44 = vpack.c.bf16 %v677_v43, %v676_v42  ;;  %v679_v46 = vld [vmem:[%s1388_s1 + $0x1e8] sm:$0xff]  ;;  %v680_v48 = vld [vmem:[%s1388_s1 + $0x1f0] sm:$0xff]  ;;  %v681_v49 = vld [vmem:[%s1388_s1 + $0x1f8] sm:$0xff] }
  0x30   :  { %800 = vmatpush1.bf16.msra.mxu0 %v799_v10  ;;  %v856_v47 = vpack.c.bf16 %v679_v46, %v678_v45  ;;  %v859_v50 = vpack.c.bf16 %v681_v49, %v680_v48  ;;  %v682_v51 = vld [vmem:[%s1388_s1 + $0x200] sm:$0xff]  ;;  %v683_v52 = vld [vmem:[%s1388_s1 + $0x208] sm:$0xff]  ;;  %v684_v54 = vld [vmem:[%s1388_s1 + $0x210] sm:$0xff] }
  0x31   :  { %836 = vmatpush1.bf16.msra.mxu1 %v835_v11  ;;  %837 = vmatprep.subr.bf16.mxu0 %v931_v3  ;;  %v862_v53 = vpack.c.bf16 %v683_v52, %v682_v51  ;;  %v685_v55 = vld [vmem:[%s1388_s1 + $0x218] sm:$0xff]  ;;  %v686_v57 = vld [vmem:[%s1388_s1 + $0x220] sm:$0xff]  ;;  %v687_v58 = vld [vmem:[%s1388_s1 + $0x228] sm:$0xff] }
  0x32   :  { %873 = vmatprep.subr.bf16.mxu1 %v931_v3  ;;  %v865_v56 = vpack.c.bf16 %v685_v55, %v684_v54  ;;  %v868_v59 = vpack.c.bf16 %v687_v58, %v686_v57  ;;  %v688_v60 = vld [vmem:[%s1388_s1 + $0x230] sm:$0xff]  ;;  %v689_v61 = vld [vmem:[%s1388_s1 + $0x238] sm:$0xff]  ;;  %v658_v63 = vld [vmem:[%s1387_s0 + $0x80] sm:$0xff] }
  0x33   :  { %168 = vmatmul.mubr.f32.vlgmr.msra.gmra.mrb[0].mxu0 %v618_v14  ;;  %v871_v62 = vpack.c.bf16 %v689_v61, %v688_v60  ;;  %v661_v0 = vld [vmem:[%s1387_s0 + $0x98] sm:$0xff]  ;;  %v660_v1 = vld [vmem:[%s1387_s0 + $0x90] sm:$0xff]  ;;  %v663_v2 = vld [vmem:[%s1387_s0 + $0xa8] sm:$0xff] }
  0x34   :  { %265 = vmatmul.mubr.f32.vlgmr.msra.gmra.mrb[0].mxu1 %v24_v16  ;;  %839 = vmatpush1.bf16.msra.mxu0 %v838_v15  ;;  %v662_v4 = vld [vmem:[%s1387_s0 + $0xa0] sm:$0xff]  ;;  %v665_v5 = vld [vmem:[%s1387_s0 + $0xb8] sm:$0xff]  ;;  %v664_v6 = vld [vmem:[%s1387_s0 + $0xb0] sm:$0xff] }
  0x35   :  { %840 = vmatprep.subr.bf16.mxu0 %v931_v3  ;;  %651 = vmatprep.mubr.msk.f32.mxu0 %vm90_vm0, %v621_v19  ;;  %v694_v31 = vld [vmem:[%s1389_s2] ss:$0 sm:$0xff]  ;;  %v511_v51 = vld [vmem:[%s1391_s4 + $0x8] sm:$0xff]  ;;  %v512_v55 = vld [vmem:[%s1391_s4 + $0x10] sm:$0xff] }
  0x36   :  { %655 = vmatprep.mubr.msk.f32.mxu1 %vm90_vm0, %v27_v20  ;;  %v514_v58 = vld [vmem:[%s1391_s4 + $0x20] sm:$0xff]  ;;  %v516_v61 = vld [vmem:[%s1391_s4 + $0x30] sm:$0xff] }
  0x37   :  { %173 = vmatmul.mubr.f32.gmra.mrb[2].mxu0 %v620_v22 }
  0x38   :  { %842 = vmatpush1.bf16.msra.mxu0 %v841_v21  ;;  %270 = vmatmul.mubr.f32.gmra.mrb[2].mxu1 %v26_v25 }
  0x39   :  { %843 = vmatprep.subr.bf16.mxu0 %v931_v3  ;;  %652 = vmatprep.mubr.msk.f32.mxu0 %vm90_vm0, %v623_v26 }
  0x3a   :  { %656 = vmatprep.mubr.msk.f32.mxu1 %vm90_vm0, %v29_v27 }
  0x3b   :  { %178 = vmatmul.mubr.f32.gmra.mrb[4].mxu0 %v622_v29 }
  0x3c   :  { %845 = vmatpush1.bf16.msra.mxu0 %v844_v28  ;;  %275 = vmatmul.mubr.f32.gmra.mrb[4].mxu1 %v28_v32 }
  0x3d   :  { %846 = vmatprep.subr.bf16.mxu0 %v931_v3  ;;  %653 = vmatprep.mubr.msk.f32.mxu0 %vm90_vm0, %v625_v33 }
  0x3e   :  { %657 = vmatprep.mubr.msk.f32.mxu1 %vm90_vm0, %v31_v34 }
  0x3f   :  { %183 = vmatmul.mubr.f32.gmra.mrb[6].mxu0 %v624_v36 }
  0x40   :  { %848 = vmatpush1.bf16.msra.mxu0 %v847_v35  ;;  %280 = vmatmul.mubr.f32.gmra.mrb[6].mxu1 %v30_v39 }
  0x41   :  { %849 = vmatprep.subr.bf16.mxu0 %v931_v3  ;;  %690 = vmatprep.mubr.msk.f32.mxu0 %vm90_vm0, %v659_v40 }
  0x42   :  { %727 = vmatprep.mubr.msk.f32.mxu1 %vm932_vm1, %v933_v7 }
  0x44   :  { %851 = vmatpush1.bf16.msra.mxu0 %v850_v41 }
  0x45   :  { %852 = vmatprep.subr.bf16.mxu0 %v931_v3 }
  0x48   :  { %854 = vmatpush1.bf16.msra.mxu0 %v853_v44 }
  0x49   :  { %855 = vmatprep.subr.bf16.mxu0 %v931_v3 }
  0x4c   :  { %857 = vmatpush1.bf16.msra.mxu0 %v856_v47 }
  0x4d   :  { %858 = vmatprep.subr.bf16.mxu0 %v931_v3 }
  0x50   :  { %860 = vmatpush1.bf16.msra.mxu0 %v859_v50  ;;  %v510_v50 = vld [vmem:[%s1391_s4] sm:$0xff] }
  0x51   :  { %861 = vmatprep.subr.bf16.mxu0 %v931_v3  ;;  %v880_v54 = vpack.c.bf16 %v511_v51, %v510_v50 }
  0x54   :  { %863 = vmatpush1.bf16.msra.mxu0 %v862_v53  ;;  %v435_v53 = vld [vmem:[%s1390_s3] sm:$0x3] }
  0x55   :  { %864 = vmatprep.subr.bf16.mxu0 %v931_v3 }
  0x58   :  { %866 = vmatpush1.bf16.msra.mxu0 %v865_v56  ;;  %v513_v56 = vld [vmem:[%s1391_s4 + $0x18] sm:$0xff] }
  0x59   :  { %867 = vmatprep.subr.bf16.mxu0 %v931_v3  ;;  %v883_v57 = vpack.c.bf16 %v513_v56, %v512_v55 }
  0x5c   :  { %869 = vmatpush1.bf16.msra.mxu0 %v868_v59  ;;  %v515_v59 = vld [vmem:[%s1391_s4 + $0x28] sm:$0xff] }
  0x5d   :  { %870 = vmatprep.subr.bf16.mxu0 %v931_v3  ;;  %v886_v60 = vpack.c.bf16 %v515_v59, %v514_v58 }
  0x60   :  { %872 = vmatpush1.bf16.msra.mxu0 %v871_v62  ;;  %v517_v62 = vld [vmem:[%s1391_s4 + $0x38] sm:$0xff] }
  0x63   :  { %396 = vmatmul.mubr.f32.vlgmr.msra.gmra.mrb[8].mxu0 %v658_v63  ;;  %v889_v63 = vpack.c.bf16 %v517_v62, %v516_v61 }
  0x64   :  { %691 = vmatprep.mubr.msk.f32.mxu0 %vm90_vm0, %v661_v0  ;;  %v518_v0 = vld [vmem:[%s1391_s4 + $0x40] sm:$0xff] }
  0x67   :  { %401 = vmatmul.mubr.f32.gmra.mrb[10].mxu0 %v660_v1  ;;  %v519_v1 = vld [vmem:[%s1391_s4 + $0x48] sm:$0xff] }
  0x68   :  { %692 = vmatprep.mubr.msk.f32.mxu0 %vm90_vm0, %v663_v2  ;;  %v892_v2 = vpack.c.bf16 %v519_v1, %v518_v0 }
  0x6b   :  { %406 = vmatmul.mubr.f32.gmra.mrb[12].mxu0 %v662_v4  ;;  %v520_v4 = vld [vmem:[%s1391_s4 + $0x50] sm:$0xff] }
  0x6c   :  { %693 = vmatprep.mubr.msk.f32.mxu0 %vm90_vm0, %v665_v5  ;;  %v521_v5 = vld [vmem:[%s1391_s4 + $0x58] sm:$0xff] }
  0x6f   :  { %411 = vmatmul.mubr.f32.gmra.mrb[14].mxu0 %v664_v6  ;;  %v895_v6 = vpack.c.bf16 %v521_v5, %v520_v4 }
 0x106   :  { %v169_v8 = vpop.f32.mrb[0].mxu0 }
 0x107   :  { %v171_v9 = vpop.f32.mrb[1].mxu0  ;;  %v266_v10 = vpop.f32.mrb[0].mxu1 }
 0x108   :  { %v267_v11 = vadd.f32 %v266_v10, %v169_v8  ;;  %v268_v12 = vpop.f32.mrb[1].mxu1  ;;  %v523_v8 = vld [vmem:[%s1391_s4 + $0x68] sm:$0xff]  ;;  %v524_v10 = vld [vmem:[%s1391_s4 + $0x70] sm:$0xff] }
 0x10a   :  { %v174_v13 = vpop.f32.mrb[2].mxu0 }
 0x10b   :  { %v176_v14 = vpop.f32.mrb[3].mxu0  ;;  %v271_v15 = vpop.f32.mrb[2].mxu1 }
 0x10c   :  { %v272_v16 = vadd.f32 %v271_v15, %v174_v13  ;;  %v273_v17 = vpop.f32.mrb[3].mxu1  ;;  %v696_v15 = vld [vmem:[%s1392_s5] ss:$0 sm:$0xff] }
 0x10e   :  { %v179_v18 = vpop.f32.mrb[4].mxu0 }
 0x10f   :  { %v181_v19 = vpop.f32.mrb[5].mxu0  ;;  %v276_v20 = vpop.f32.mrb[4].mxu1 }
 0x110   :  { %v277_v21 = vadd.f32 %v276_v20, %v179_v18  ;;  %v278_v22 = vpop.f32.mrb[5].mxu1 }
 0x112   :  { %v184_v23 = vpop.f32.mrb[6].mxu0 }
 0x113   :  { %v186_v24 = vpop.f32.mrb[7].mxu0  ;;  %v281_v25 = vpop.f32.mrb[6].mxu1 }
 0x114   :  { %v282_v26 = vadd.f32 %v281_v25, %v184_v23  ;;  %v283_v27 = vpop.f32.mrb[7].mxu1 }
 0x136   :  { %v397_v28 = vpop.f32.mrb[8].mxu0 }
 0x137   :  { %v416_v29 = vadd.f32 %v397_v28, %v267_v11  ;;  %v399_v30 = vpop.f32.mrb[9].mxu0  ;;  %v525_v11 = vld [vmem:[%s1391_s4 + $0x78] sm:$0xff] }
 0x138   :  { %v901_v12 = vpack.c.bf16 %v525_v11, %v524_v10 }
 0x139   :  { %v427_v33 = vadd.f32 %v694_v31, %v416_v29 }
 0x13a   :  { %v402_v32 = vpop.f32.mrb[10].mxu0 }
 0x13b   :  { %v417_v34 = vadd.f32 %v402_v32, %v272_v16  ;;  %v404_v35 = vpop.f32.mrb[11].mxu0  ;;  %v431_v38 = vmax.f32 %v427_v33, 0.0 }
 0x13d   :  { %v428_v36 = vadd.f32 %v694_v31, %v417_v34 }
 0x13e   :  { %v407_v37 = vpop.f32.mrb[12].mxu0 }
 0x13f   :  { %v432_v39 = vmax.f32 %v428_v36, 0.0  ;;  %v418_v40 = vadd.f32 %v407_v37, %v277_v21  ;;  %v409_v41 = vpop.f32.mrb[13].mxu0 }
 0x141   :  { %v874_v42 = vpack.c.bf16 %v432_v39, %v431_v38  ;;  %v429_v44 = vadd.f32 %v694_v31, %v418_v40 }
 0x142   :  { %v412_v43 = vpop.f32.mrb[14].mxu0 }
 0x143   :  { %v419_v45 = vadd.f32 %v412_v43, %v282_v26  ;;  %v414_v46 = vpop.f32.mrb[15].mxu0  ;;  %875 = vmatpush3.bf16.msra.mxu1 %v874_v42  ;;  %v433_v48 = vmax.f32 %v429_v44, 0.0 }
 0x144   :  { %876 = vmatprep.subr.bf16.mxu1 %v931_v3 }
 0x145   :  { %v430_v47 = vadd.f32 %v694_v31, %v419_v45 }
 0x147   :  { %v434_v49 = vmax.f32 %v430_v47, 0.0 }
 0x149   :  { %v877_v52 = vpack.c.bf16 %v434_v49, %v433_v48 }
 0x14b   :  { %878 = vmatpush3.bf16.msra.mxu1 %v877_v52 }
 0x14c   :  { %879 = vmatprep.subr.bf16.mxu1 %v931_v3 }
 0x14e   :  { %728 = vmatmul.mubr.msk.f32.vlgmr.msra.gmra.mrb[8].mxu1 %vm436_vm2, %v435_v53 }
 0x14f   :  { %881 = vmatpush3.bf16.msra.mxu1 %v880_v54  ;;  %762 = vmatprep.mubr.msk.f32.mxu1 %vm932_vm1, %v933_v7  ;;  %v522_v7 = vld [vmem:[%s1391_s4 + $0x60] sm:$0xff]  ;;  %s907_s4 = scalar_lea.vmem %s611_s29, 32 }
 0x150   :  { %882 = vmatprep.subr.bf16.mxu1 %v931_v3  ;;  %v898_v9 = vpack.c.bf16 %v523_v8, %v522_v7  ;;  %p908_p0 = scmp.ne.s32.totalorder %s611_s29, %s907_s4  ;;  %p913_p2 = scmp.lt.s32.totalorder %s907_s4, %s907_s4 }
 0x152   :  { %p914_p3 = por %p913_p2, %p912_p1 }
 0x153   :  { %884 = vmatpush3.bf16.msra.mxu1 %v883_v57 }
 0x154   :  { %885 = vmatprep.subr.bf16.mxu1 %v931_v3  ;;  %p915_p4 = pnand %p914_p3, %p908_p0 }
 0x157   :  { %887 = vmatpush3.bf16.msra.mxu1 %v886_v60 }
 0x158   :  { %888 = vmatprep.subr.bf16.mxu1 %v931_v3 }
 0x15b   :  { %890 = vmatpush3.bf16.msra.mxu1 %v889_v63 }
 0x15c   :  { %891 = vmatprep.subr.bf16.mxu1 %v931_v3 }
 0x15f   :  { %893 = vmatpush3.bf16.msra.mxu1 %v892_v2 }
 0x160   :  { %894 = vmatprep.subr.bf16.mxu1 %v931_v3 }
 0x163   :  { %896 = vmatpush3.bf16.msra.mxu1 %v895_v6 }
 0x164   :  { %897 = vmatprep.subr.bf16.mxu1 %v931_v3 }
 0x167   :  { %899 = vmatpush3.bf16.msra.mxu1 %v898_v9 }
 0x168   :  { %900 = vmatprep.subr.bf16.mxu1 %v931_v3 }
 0x16b   :  { %902 = vmatpush3.bf16.msra.mxu1 %v901_v12 }
 0x221   :  { %v506_v13 = vpop.f32.mrb[8].mxu1 }
 0x222   :  { %v729_v14 = vpop.f32.mrb[9].mxu1  ;;  %763 = vmatmul.mubr.f32.vlgmr.msra.gmra.mrb[10].mxu1 %v506_v13 }
 0x2f5   :  { %v599_v16 = vpop.f32.mrb[10].mxu1 }
 0x2f6   :  { %v600_v17 = vadd.f32 %v696_v15, %v599_v16  ;;  %v764_v18 = vpop.f32.mrb[11].mxu1 }
 0x2f8   :  { %603 = vst [vmem:[#allocation2] sm:$0x3] %v600_v17 }
 0x2f9   :  { %918 = shalt.err (!%p915_p4)
}
 0x2fa   :  { %s919_s7 = scalar_lea.hbm %s1393_s6, 32 }
 0x2fb   :  { %p920_p5 = scmp.ne.s32.totalorder %s1393_s6, %s919_s7  ;;  %p923_p6 = scmp.lt.u32.totalorder %s919_s7, %s1393_s6 }
 0x2fd   :  { %p925_p7 = pnand %p923_p6, %p920_p5 }
 0x2ff   :  { %928 = shalt.err (!%p925_p7)
}
 0x300   :  { %613 = dma.vmem_to_hbm [thread:$0]  %s611_s29, 32, %s1393_s6, [#allocation3]  }
 0x301   :  { %929 = dma.done.wait [#allocation3], 32  }
 0x302   :  { %930 = vsyncadd [#allocation3], 4294967264 }
 0x303   :  { %617 = vsyncpa [#allocation3], 1 }

</bundles_post_ra>
